<compile_context>
chip_gen: v6e
topology: v6e:2x2x1
jax: 0.10.0
libtpu: 0.0.40
codegen_flags: <defaults>
</compile_context>

<pallas_src>
import functools
import math

import jax
import jax.numpy as jnp
from jax.experimental import pallas as pl
from jax.experimental.pallas import tpu as pltpu


_SMALL_FALLBACK_BYTES = 512 * 1024       # below this, plain jnp.max wins


def _sublane_pack(itemsize):
    # sub-32-bit dtypes pack along sublanes: 8 rows (f32), 16 (bf16), 32 (int8)
    return {4: 8, 2: 16, 1: 32}.get(itemsize, 8)


def _tpu_params():
    """(target_tile_bytes, num_tensorcores, vmem_capacity_bytes) with safe defaults."""
    vmem_cap = 128 << 20
    num_cores = 1
    try:
        info = pltpu.get_tpu_info()
        vmem_cap = int(getattr(info, "vmem_capacity_bytes", vmem_cap))
        for attr in ("num_cores", "core_count", "num_tensorcores",
                     "tensorcore_count", "cores_per_chip"):
            val = getattr(info, attr, None)
            if val is not None:
                num_cores = max(1, int(val))
                break
    except Exception:
        # Unknown part: conservative defaults (single core, 8 MiB tiles) are
        # always safe/correct; only a mild perf loss on v7x.
        pass
    # Generation-aware streaming tile: 64-MiB-VMEM parts (v7x class) have ~3.2
    # TB/s HBM, so ~16 MiB tiles keep the ~0.35 us/step overhead <5%;
    # 128-MiB-VMEM parts (v5e/v6e) are already amortized at 8 MiB.
    target_bytes = (16 << 20) if vmem_cap <= (64 << 20) else (8 << 20)
    return target_bytes, num_cores, vmem_cap


def _choose_tiles(B, N, C, itemsize, *, target_bytes, num_cores):
    pack = _sublane_pack(itemsize)

    # ---- C (lane) tile ------------------------------------------------------
    # Keep lane blocks dense (multiples of 128) when splitting. Split when a
    # pack-row tile of the full C would blow the byte budget, or when the batch
    # is too small to feed every TensorCore on a multi-core part.
    max_tc = max(128, (target_bytes // max(1, pack * itemsize)) // 128 * 128)
    tc = C
    if C > 128:
        if C > max_tc:
            tc = max_tc
        if num_cores > 1 and B < num_cores and C >= num_cores * 128:
            per_core = -(-C // num_cores)
            per_core = -(-per_core // 128) * 128          # round up to full lanes
            tc = min(tc, per_core)

    # ---- N (reduction) tile: multiple of the sublane pack -------------------
    if N <= pack:
        tn = N                                            # block dim == full dim
    else:
        max_rows = max(pack, target_bytes // max(1, tc * itemsize))
        tn = max(pack, min((N // pack) * pack, (max_rows // pack) * pack))

    # ---- B tile: fill the remaining byte budget ------------------------------
    row_bytes = tn * tc * itemsize
    tb = max(1, min(B, target_bytes // max(1, row_bytes)))

    # Only multi-TensorCore parts need a forced batch split to create parallel
    # blocks; single-core parts keep the whole batch (no extra step overhead).
    b_blocks = -(-B // tb)
    c_blocks = -(-C // tc)
    if num_cores > 1 and b_blocks * c_blocks < num_cores and B >= num_cores:
        tb = -(-B // num_cores)

    return tb, tn, tc


def _max_dim1_kernel(x_ref, o_ref, *, n_total, tn):
    # x_ref: (TB, TN, TC) input tile ; o_ref: (TB, 1, TC) resident accumulator.
    k = pl.program_id(2)                       # reduction axis (innermost)
    last_k = pl.num_programs(2) - 1

    x = x_ref[...]

    def _accumulate(tile_max):
        @pl.when(k == 0)
        def _():
            o_ref[...] = tile_max

        @pl.when(k > 0)
        def _():
            o_ref[...] = jnp.maximum(o_ref[...], tile_max)

    if n_total % tn != 0:
        # Only the last N tile carries padded rows; mask (and pay for it) there
        # only. The mask is a (TN, 1) column compared against the remaining-row
        # scalar, broadcast over batch and lanes by jnp.where.
        if jnp.issubdtype(x.dtype, jnp.floating):
            neg = jnp.array(-jnp.inf, x.dtype)
        else:
            neg = jnp.array(jnp.iinfo(x.dtype).min, x.dtype)

        @pl.when(k == last_k)
        def _():
            rows_left = n_total - k * tn
            row = jax.lax.broadcasted_iota(jnp.int32, (x.shape[1], 1), 0)
            xm = jnp.where((row < rows_left)[None, :, :], x, neg)
            _accumulate(jnp.max(xm, axis=1, keepdims=True))

        @pl.when(k != last_k)
        def _():
            _accumulate(jnp.max(x, axis=1, keepdims=True))
    else:
        _accumulate(jnp.max(x, axis=1, keepdims=True))


def _max_dim1_pallas(x, *, target_bytes, num_cores, vmem_cap):
    B, N, C = x.shape
    itemsize = jnp.dtype(x.dtype).itemsize
    tb, tn, tc = _choose_tiles(B, N, C, itemsize,
                               target_bytes=target_bytes, num_cores=num_cores)

    tile_bytes = tb * tn * tc * itemsize
    out_tile_bytes = tb * tc * itemsize
    # Honest budget: double-buffered input + double-buffered output + one extra
    # tile of headroom for the masked-tail temporaries + fixed slack.
    vmem_limit = int(2 * tile_bytes + 2 * out_tile_bytes + tile_bytes + (4 << 20))
    vmem_limit = max(16 << 20, min(vmem_limit, vmem_cap - (8 << 20)))

    grid = (pl.cdiv(B, tb), pl.cdiv(C, tc), pl.cdiv(N, tn))
    kernel = functools.partial(_max_dim1_kernel, n_total=N, tn=tn)

    return pl.pallas_call(
        kernel,
        out_shape=jax.ShapeDtypeStruct((B, 1, C), x.dtype),
        grid_spec=pltpu.PrefetchScalarGridSpec(
            num_scalar_prefetch=0,
            grid=grid,
            in_specs=[pl.BlockSpec((tb, tn, tc), lambda b, c, k: (b, k, c))],
            # Constant in k -> output block stays resident (accumulator).
            out_specs=pl.BlockSpec((tb, 1, tc), lambda b, c, k: (b, 0, c)),
        ),
        compiler_params=pltpu.CompilerParams(
            dimension_semantics=("parallel", "parallel", "arbitrary"),
            vmem_limit_bytes=vmem_limit,
        ),
        cost_estimate=pl.CostEstimate(
            flops=B * N * C,
            transcendentals=0,
            bytes_accessed=(B * N * C + B * C) * itemsize,
        ),
    )(x)


def max_dim1_keepdim(x, *, force_pallas=False):
    """Equivalent of torch.max(x, 1, keepdim=True)[0] for a 3-D input."""
    # TODO(synk): torch.max also returns argmax indices; the module's forward
    # only uses values, so only values are produced here.
    B, N, C = x.shape
    itemsize = jnp.dtype(x.dtype).itemsize
    nbytes = B * N * C * itemsize
    if not force_pallas and nbytes < _SMALL_FALLBACK_BYTES:
        # Tiny input: per-step pipeline overhead would dominate; XLA's fused
        # reduce is faster than a Pallas launch at this size.
        return jnp.max(x, axis=1, keepdims=True)

    target_bytes, num_cores, vmem_cap = _tpu_params()

    # Lane-dense layout for non-multiple-of-128 C: fold g rows into the lane
    # dim ((B,N,C) -> (B,N/g,g*C)), reduce over the folded row axis, then take
    # a final cheap max over the g folded groups. This is a free row-major
    # reshape and keeps HBM tiles / VPU maxima at full lane utilization.
    if C % 128 != 0:
        g = 128 // math.gcd(C, 128)
        if g > 1 and N % g == 0 and N // g >= 1:
            folded = x.reshape(B, N // g, g * C)
            red = _max_dim1_pallas(folded, target_bytes=target_bytes,
                                   num_cores=num_cores, vmem_cap=vmem_cap)
            return jnp.max(red.reshape(B, 1, g, C), axis=2)
        # TODO(synk): narrow C with N not divisible by g falls through to a
        # lane-sparse full-C block; could pad N up to a multiple of g instead.

    return _max_dim1_pallas(x, target_bytes=target_bytes,
                            num_cores=num_cores, vmem_cap=vmem_cap)


if __name__ == "__main__":
    key = jax.random.PRNGKey(0)
    k_small, k_med, k_bf16, k_fold = jax.random.split(key, 4)

    # 1) Module-consistent small shape, forced through the Pallas kernel.
    x_small = jax.random.normal(k_small, (2, 16, 128), dtype=jnp.float32)
    out = jax.block_until_ready(max_dim1_keepdim(x_small, force_pallas=True))
    ref = jnp.max(x_small, axis=1, keepdims=True)
    assert out.shape == (2, 1, 128), out.shape
    assert jnp.array_equal(out, ref), "pallas (small, forced) mismatch"

    # Default wrapper (small-input fast path) must agree too.
    out_fast = jax.block_until_ready(max_dim1_keepdim(x_small))
    assert jnp.array_equal(out_fast, ref), "fallback mismatch"

    # 2) Moderate shape exercising batch/N tiling and the gated ragged-tail
    #    mask (1037 rows is not a multiple of the N tile).
    x_med = jax.random.normal(k_med, (4, 1037, 256), dtype=jnp.float32)
    out_med = jax.block_until_ready(max_dim1_keepdim(x_med))
    ref_med = jnp.max(x_med, axis=1, keepdims=True)
    assert out_med.shape == (4, 1, 256), out_med.shape
    assert jnp.array_equal(out_med, ref_med), "pallas (medium) mismatch"

    # 3) bf16 (sublane pack of 16) with a ragged tail (40 % 32 != 0).
    x_bf16 = jax.random.normal(k_bf16, (2, 40, 128), dtype=jnp.bfloat16)
    out_bf = jax.block_until_ready(max_dim1_keepdim(x_bf16, force_pallas=True))
    ref_bf = jnp.max(x_bf16, axis=1, keepdims=True)
    assert jnp.array_equal(out_bf, ref_bf), "pallas (bf16) mismatch"

    # 4) Narrow C (=64): exercises the lane-density fold (g=2, N % g == 0).
    x_fold = jax.random.normal(k_fold, (2, 32, 64), dtype=jnp.float32)
    out_fold = jax.block_until_ready(max_dim1_keepdim(x_fold, force_pallas=True))
    ref_fold = jnp.max(x_fold, axis=1, keepdims=True)
    assert out_fold.shape == (2, 1, 64), out_fold.shape
    assert jnp.array_equal(out_fold, ref_fold), "pallas (folded narrow-C) mismatch"

    print("KERNEL_OK")
</pallas_src>

<mosaic_0001>
module attributes {stable_mosaic.version = 11 : i64} {
  func.func @_max_dim1_kernel(%arg0: i32, %arg1: i32, %arg2: i32, %arg3: memref<2x16x128xf32, #tpu.memory_space<vmem>>, %arg4: memref<2x1x128xf32, #tpu.memory_space<vmem>>) attributes {dimension_semantics = [#tpu.dimension_semantics<parallel>, #tpu.dimension_semantics<parallel>, #tpu.dimension_semantics<arbitrary>], iteration_bounds = array<i64: 1, 1, 1>, scalar_prefetch = 0 : i64, scratch_operands = 0 : i64, tpu.core_type = #tpu.core_type<tc>, window_params = [{transform_indices = @transform_0, window_bounds = array<i64: 2, 16, 128>}, {transform_indices = @transform_1, window_bounds = array<i64: 2, 1, 128>}]} {
    %c0 = arith.constant 0 : index
    %c0_0 = arith.constant 0 : index
    %c0_1 = arith.constant 0 : index
    %0 = vector.load %arg3[%c0, %c0_0, %c0_1] : memref<2x16x128xf32, #tpu.memory_space<vmem>>, vector<2x16x128xf32>
    %cst = arith.constant dense<0xFF800000> : vector<2x128xf32>
    %1 = vector.multi_reduction <maximumf>, %0, %cst [1] : vector<2x16x128xf32> to vector<2x128xf32>
    %2 = vector.shape_cast %1 : vector<2x128xf32> to vector<2x1x128xf32>
    %c0_i32 = arith.constant 0 : i32
    %3 = arith.cmpi eq, %arg2, %c0_i32 : i32
    %4 = arith.extui %3 : i1 to i32
    %c0_i32_2 = arith.constant 0 : i32
    %5 = arith.cmpi ne, %4, %c0_i32_2 : i32
    scf.if %5 {
      %c0_5 = arith.constant 0 : index
      %c0_6 = arith.constant 0 : index
      %c0_7 = arith.constant 0 : index
      %9 = vector.load %arg4[%c0_5, %c0_6, %c0_7] : memref<2x1x128xf32, #tpu.memory_space<vmem>>, vector<2x1x128xf32>
      tpu.vector_store %arg4[%c0_5, %c0_6, %c0_7], %2 {strides = array<i32>} : memref<2x1x128xf32, #tpu.memory_space<vmem>>, vector<2x1x128xf32>,
    } else {
    }
    %c0_i32_3 = arith.constant 0 : i32
    %6 = arith.cmpi sgt, %arg2, %c0_i32_3 : i32
    %7 = arith.extui %6 : i1 to i32
    %c0_i32_4 = arith.constant 0 : i32
    %8 = arith.cmpi ne, %7, %c0_i32_4 : i32
    scf.if %8 {
      %c0_5 = arith.constant 0 : index
      %c0_6 = arith.constant 0 : index
      %c0_7 = arith.constant 0 : index
      %9 = vector.load %arg4[%c0_5, %c0_6, %c0_7] : memref<2x1x128xf32, #tpu.memory_space<vmem>>, vector<2x1x128xf32>
      %10 = arith.maximumf %9, %2 : vector<2x1x128xf32>
      %c0_8 = arith.constant 0 : index
      %c0_9 = arith.constant 0 : index
      %c0_10 = arith.constant 0 : index
      %11 = vector.load %arg4[%c0_8, %c0_9, %c0_10] : memref<2x1x128xf32, #tpu.memory_space<vmem>>, vector<2x1x128xf32>
      tpu.vector_store %arg4[%c0_8, %c0_9, %c0_10], %10 {strides = array<i32>} : memref<2x1x128xf32, #tpu.memory_space<vmem>>, vector<2x1x128xf32>,
    } else {
    }
    return
  }
  func.func @transform_0(%arg0: i32, %arg1: i32, %arg2: i32) -> (i32, i32, i32) {
    %c0_i32 = arith.constant 0 : i32
    return %arg0, %arg2, %arg1 : i32, i32, i32
  }
  func.func @transform_1(%arg0: i32, %arg1: i32, %arg2: i32) -> (i32, i32, i32) {
    %c0_i32 = arith.constant 0 : i32
    %c0_i32_0 = arith.constant 0 : i32
    return %arg0, %c0_i32, %arg1 : i32, i32, i32
  }
}

</mosaic_0001>

<bundles_post_ra>
// kernel: tpu_custom_call.1
= control target key start
LH: loop header
LB: loop body
LE: loop exit
PB: predicated region body
PF: predicated region fallthrough
CT: control target
= control target key end

     0   :  { %6 = vsyncpa [#allocation3], 0  ;;  %s146_s0 = inlined_call_operand.hbm [shape: f32[2,16,128], index: 0, kind: input, shape index: {}]   ;;  %s147_s1 = inlined_call_operand.hbm [shape: f32[2,1,128], index: 1, kind: output, shape index: {}]  }
   0x1   :  { %7 = vsyncpa [#allocation4], 0  ;;  %s124_s6 = smov [#allocation2]  }
   0x2   :  { %s13_s7 = sshll.u32 %s124_s6, 4  ;;  %s14_s7 = int_to_ptr.vmem [resolvable:$true] %s13_s7 }
   0x3   :  { %s88_s8 = scalar_lea.vmem %s14_s7, 512  ;;  %p93_p1 = scmp.lt.s32.totalorder %s14_s7, %s14_s7 }
   0x4   :  { %p89_p0 = scmp.ne.s32.totalorder %s14_s7, %s88_s8  ;;  %p94_p2 = scmp.lt.s32.totalorder %s88_s8, %s88_s8 }
   0x6   :  { %p95_p3 = por %p94_p2, %p93_p1 }
   0x8   :  { %p96_p4 = pnand %p95_p3, %p89_p0 }
   0xa   :  { %99 = shalt.err (!%p96_p4)
}
   0xb   :  { %s125_s9 = smov 128   ;;  %s126_s10 = smov 8  }
   0xc   :  { %19 = dma.hbm_to_vmem [thread:$0]  %s146_s0, 512, %s14_s7, [#allocation3], %s125_s9, %s125_s9, %s126_s10  }
   0xd   :  { %120 = dma.done.wait [#allocation3], 512  }
   0xe   :  { %121 = vsyncadd [#allocation3], 4294966784  ;;  %v23_v0 = vld [vmem:[#allocation2] sm:$0xff]  ;;  %v24_v1 = vld [vmem:[#allocation2 + $0x8] sm:$0xff]  ;;  %s127_s13 = smov [#allocation5]  }
   0xf   :  { %v25_v2 = vld [vmem:[#allocation2 + $0x10] sm:$0xff]  ;;  %v27_v3 = vmax.f32 %v23_v0, %v24_v1  ;;  %v26_v4 = vld [vmem:[#allocation2 + $0x18] sm:$0xff]  ;;  %s62_s14 = sshll.u32 %s127_s13, 4  ;;  %s63_s14 = int_to_ptr.vmem [resolvable:$true] %s62_s14 }
  0x10   :  { %v34_v5 = vmax.f32 %v25_v2, %v26_v4  ;;  %s100_s0 = scalar_lea.vmem %s63_s14, 32  ;;  %p105_p6 = scmp.lt.s32.totalorder %s63_s14, %s63_s14 }
  0x11   :  { %v28_v6 = vrot.slane %v27_v3, 4  ;;  %p101_p5 = scmp.ne.s32.totalorder %s63_s14, %s100_s0  ;;  %p106_p7 = scmp.lt.s32.totalorder %s100_s0, %s100_s0 }
  0x12   :  { %v35_v7 = vrot.slane %v34_v5, 4 }
  0x13   :  { %v29_v8 = vmax.f32 %v27_v3, %v28_v6  ;;  %p107_p8 = por %p106_p7, %p105_p6 }
  0x14   :  { %v36_v9 = vmax.f32 %v34_v5, %v35_v7 }
  0x15   :  { %v30_v10 = vrot.slane %v29_v8, 2  ;;  %p108_p9 = pnand %p107_p8, %p101_p5 }
  0x16   :  { %v37_v11 = vrot.slane %v36_v9, 2 }
  0x17   :  { %v31_v12 = vmax.f32 %v29_v8, %v30_v10 }
  0x18   :  { %v38_v13 = vmax.f32 %v36_v9, %v37_v11 }
  0x19   :  { %v32_v14 = vrot.slane %v31_v12, 1 }
  0x1a   :  { %v39_v15 = vrot.slane %v38_v13, 1 }
  0x1b   :  { %v33_v16 = vmax.f32 %v31_v12, %v32_v14 }
  0x1c   :  { %v40_v17 = vmax.f32 %v38_v13, %v39_v15 }
  0x1d   :  { %45 = vst [vmem:[#allocation5] sm:$0x1] %v33_v16 }
  0x1e   :  { %46 = vst [vmem:[#allocation5 + $0x1] sm:$0x1] %v40_v17 }
  0x1f   :  { %111 = shalt.err (!%p108_p9)
}
  0x20   :  { %s128_s15 = smov 16   ;;  %s129_s16 = smov 1  }
  0x21   :  { %68 = dma.vmem_to_hbm [thread:$0]  %s63_s14, 32, %s147_s1, [#allocation4], %s128_s15, %s128_s15, %s129_s16  }
  0x22   :  { %122 = dma.done.wait [#allocation4], 32  }
  0x23   :  { %123 = vsyncadd [#allocation4], 4294967264 }
  0x24   :  { %72 = vsyncpa [#allocation3], 1 }
  0x25   :  { %73 = vsyncpa [#allocation4], 1 }

</bundles_post_ra>
